<compile_context>
chip_gen: v6e
topology: v6e:2x2x1
jax: 0.10.0
libtpu: 0.0.40
codegen_flags: <defaults>
</compile_context>

<pallas_src>
import functools

import jax
import jax.numpy as jnp
from jax.experimental import pallas as pl
from jax.experimental.pallas import tpu as pltpu

NUM_CLASSES = 5
LANES = 128
MAX_TILE_ROWS = 512   # 512 * 128 pixels * 6 ch * 4 B * 2 buf ≈ 3 MiB of pred


def _pick_tile_rows(rows, max_rows=MAX_TILE_ROWS):
    """Largest row-tile that divides `rows`, keeping the (8,128) rule happy."""
    if rows <= max_rows:
        return rows
    for cand in range(max_rows, 0, -1):
        if rows % cand == 0 and cand % 8 == 0:
            return cand
    # No aligned divisor: fall back to the full extent (still legal).
    return rows


def _aleatoric_kernel(pred_ref, true_ref, std_ref, dep_ref, ce_ref, *,
                      num_classes, mask_invalid):
    # pred_ref: [1, C+1, TR, 128] f32   true_ref: [1, TR, 128] int8
    # std_ref / dep_ref: [1, TR, 128]   ce_ref: [1, 1, 1, 128] (lane partials)

    # --- aleatoric terms from the extra "variance" channel ------------------
    var = pred_ref[0, num_classes]                       # [TR, 128]
    # TODO(synk): sqrt of a negative variance channel is NaN — same behavior
    # as the reference module; nothing clamps it here either.
    std_ref[0] = jnp.sqrt(var)
    dep_ref[0] = jnp.exp(var) - 1.0                      # exp(var) - ones_like

    # --- softmax cross entropy over the class channels (static slices) ------
    t = true_ref[0].astype(jnp.int32)                    # widen in-register

    logits = [pred_ref[0, c] for c in range(num_classes)]  # C dense slabs

    m = logits[0]
    for c in range(1, num_classes):                      # elementwise max, VALU
        m = jnp.maximum(m, logits[c])

    sumexp = jnp.zeros_like(m)
    true_logit = jnp.zeros_like(m)
    for c in range(num_classes):
        sumexp = sumexp + jnp.exp(logits[c] - m)         # EUP
        true_logit = true_logit + jnp.where(t == c, logits[c], 0.0)

    nll = jnp.log(sumexp) + m - true_logit               # [TR, 128]
    if mask_invalid:
        # Padded pixels carry label -1; exclude them from the CE sum.
        nll = jnp.where(t >= 0, nll, 0.0)

    # Per-block, per-lane partial sum: one small sublane reduce per grid step;
    # the cross-lane reduction and the mean happen in the JAX wrapper.
    ce_ref[0, 0] = jnp.sum(nll, axis=0, keepdims=True)   # [1, 128]


def aleatoric_loss(pred, true, num_classes=NUM_CLASSES):
    """pred: [N, num_classes+1, H, W] float ; true: [N, H, W] integer labels."""
    n, c1, h, w = pred.shape
    assert c1 == num_classes + 1
    s = h * w

    s_pad = ((s + LANES - 1) // LANES) * LANES
    rows = s_pad // LANES
    mask_invalid = s_pad != s

    pred_f = pred.reshape(n, c1, s).astype(jnp.float32)
    true_i = true.reshape(n, s).astype(jnp.int8)         # narrow label traffic
    if mask_invalid:
        pred_f = jnp.pad(pred_f, ((0, 0), (0, 0), (0, s_pad - s)))
        true_i = jnp.pad(true_i, ((0, 0), (0, s_pad - s)), constant_values=-1)

    # Lane-dense re-layout: pixels on (sublane, lane), channels as slabs.
    pred_f = pred_f.reshape(n, c1, rows, LANES)
    true_i = true_i.reshape(n, rows, LANES)

    tr = _pick_tile_rows(rows)
    n_row_tiles = rows // tr

    kernel = functools.partial(_aleatoric_kernel, num_classes=num_classes,
                               mask_invalid=mask_invalid)

    std_o, dep_o, ce_partial = pl.pallas_call(
        kernel,
        out_shape=(
            jax.ShapeDtypeStruct((n, rows, LANES), jnp.float32),          # std
            jax.ShapeDtypeStruct((n, rows, LANES), jnp.float32),          # dep
            jax.ShapeDtypeStruct((n, n_row_tiles, 1, LANES), jnp.float32),  # CE lane partials
        ),
        grid_spec=pltpu.PrefetchScalarGridSpec(
            num_scalar_prefetch=0,
            grid=(n, n_row_tiles),
            in_specs=[
                pl.BlockSpec((1, c1, tr, LANES), lambda i, j: (i, 0, j, 0)),
                pl.BlockSpec((1, tr, LANES), lambda i, j: (i, j, 0)),
            ],
            out_specs=[
                pl.BlockSpec((1, tr, LANES), lambda i, j: (i, j, 0)),
                pl.BlockSpec((1, tr, LANES), lambda i, j: (i, j, 0)),
                pl.BlockSpec((1, 1, 1, LANES), lambda i, j: (i, j, 0, 0)),
            ],
        ),
        compiler_params=pltpu.CompilerParams(
            # No resident accumulator → both axes independent → megacore-able.
            dimension_semantics=("parallel", "parallel"),
        ),
    )(pred_f, true_i)

    std = std_o.reshape(n, s_pad)[:, :s].reshape(n, h, w)
    variance_depressor = dep_o.reshape(n, s_pad)[:, :s].reshape(n, h, w)
    undistorted_loss = jnp.sum(ce_partial) / jnp.float32(n * s)   # mean reduction
    return std, variance_depressor, undistorted_loss


def _reference(pred, true, num_classes=NUM_CLASSES):
    pred = pred.astype(jnp.float32)
    var = pred[:, num_classes]
    std = jnp.sqrt(var)
    dep = jnp.exp(var) - 1.0
    logits = pred[:, :num_classes]                          # [N, C, H, W]
    logits = jnp.moveaxis(logits, 1, -1)                    # [N, H, W, C]
    logz = jax.nn.logsumexp(logits, axis=-1)
    true_logit = jnp.take_along_axis(logits, true[..., None], axis=-1)[..., 0]
    ce = jnp.mean(logz - true_logit)
    return std, dep, ce


if __name__ == "__main__":
    key = jax.random.PRNGKey(0)
    k1, k2 = jax.random.split(key)

    n, h, w = 2, 16, 16
    pred = jax.random.normal(k1, (n, NUM_CLASSES + 1, h, w), dtype=jnp.float32)
    # keep the variance channel non-negative so sqrt stays finite
    pred = pred.at[:, NUM_CLASSES].set(jnp.abs(pred[:, NUM_CLASSES]))
    true = jax.random.randint(k2, (n, h, w), 0, NUM_CLASSES, dtype=jnp.int32)

    std, dep, loss = aleatoric_loss(pred, true)
    jax.block_until_ready((std, dep, loss))

    std_r, dep_r, loss_r = _reference(pred, true)
    assert jnp.allclose(std, std_r, atol=1e-5)
    assert jnp.allclose(dep, dep_r, atol=1e-5)
    assert jnp.allclose(loss, loss_r, atol=1e-5)

    print("KERNEL_OK")
</pallas_src>

<mosaic_0001>
module attributes {stable_mosaic.version = 11 : i64} {
  func.func @_aleatoric_kernel(%arg0: i32, %arg1: i32, %arg2: memref<1x6x2x128xf32, #tpu.memory_space<vmem>>, %arg3: memref<1x2x128xi8, #tpu.memory_space<vmem>>, %arg4: memref<1x2x128xf32, #tpu.memory_space<vmem>>, %arg5: memref<1x2x128xf32, #tpu.memory_space<vmem>>, %arg6: memref<1x1x1x128xf32, #tpu.memory_space<vmem>>) attributes {dimension_semantics = [#tpu.dimension_semantics<parallel>, #tpu.dimension_semantics<parallel>], iteration_bounds = array<i64: 2, 1>, scalar_prefetch = 0 : i64, scratch_operands = 0 : i64, tpu.core_type = #tpu.core_type<tc>, window_params = [{transform_indices = @transform_0, window_bounds = array<i64: 1, 6, 2, 128>}, {transform_indices = @transform_1, window_bounds = array<i64: 1, 2, 128>}, {transform_indices = @transform_2, window_bounds = array<i64: 1, 2, 128>}, {transform_indices = @transform_3, window_bounds = array<i64: 1, 2, 128>}, {transform_indices = @transform_4, window_bounds = array<i64: 1, 1, 1, 128>}]} {
    %c0 = arith.constant 0 : index
    %c5 = arith.constant 5 : index
    %c0_0 = arith.constant 0 : index
    %c0_1 = arith.constant 0 : index
    %0 = vector.load %arg2[%c0, %c5, %c0_0, %c0_1] : memref<1x6x2x128xf32, #tpu.memory_space<vmem>>, vector<1x1x2x128xf32>
    %1 = vector.shape_cast %0 : vector<1x1x2x128xf32> to vector<2x128xf32>
    %2 = math.sqrt %1 : vector<2x128xf32>
    %c0_2 = arith.constant 0 : index
    %c0_3 = arith.constant 0 : index
    %c0_4 = arith.constant 0 : index
    %3 = vector.load %arg4[%c0_2, %c0_3, %c0_4] : memref<1x2x128xf32, #tpu.memory_space<vmem>>, vector<1x2x128xf32>
    %4 = vector.shape_cast %3 : vector<1x2x128xf32> to vector<2x128xf32>
    %5 = vector.shape_cast %2 : vector<2x128xf32> to vector<1x2x128xf32>
    tpu.vector_store %arg4[%c0_2, %c0_3, %c0_4], %5 {strides = array<i32>} : memref<1x2x128xf32, #tpu.memory_space<vmem>>, vector<1x2x128xf32>,
    %6 = math.exp %1 : vector<2x128xf32>
    %cst = arith.constant 1.000000e+00 : f32
    %7 = vector.broadcast %cst : f32 to vector<2x128xf32>
    %8 = arith.subf %6, %7 : vector<2x128xf32>
    %c0_5 = arith.constant 0 : index
    %c0_6 = arith.constant 0 : index
    %c0_7 = arith.constant 0 : index
    %9 = vector.load %arg5[%c0_5, %c0_6, %c0_7] : memref<1x2x128xf32, #tpu.memory_space<vmem>>, vector<1x2x128xf32>
    %10 = vector.shape_cast %9 : vector<1x2x128xf32> to vector<2x128xf32>
    %11 = vector.shape_cast %8 : vector<2x128xf32> to vector<1x2x128xf32>
    tpu.vector_store %arg5[%c0_5, %c0_6, %c0_7], %11 {strides = array<i32>} : memref<1x2x128xf32, #tpu.memory_space<vmem>>, vector<1x2x128xf32>,
    %c0_8 = arith.constant 0 : index
    %c0_9 = arith.constant 0 : index
    %c0_10 = arith.constant 0 : index
    %12 = vector.load %arg3[%c0_8, %c0_9, %c0_10] : memref<1x2x128xi8, #tpu.memory_space<vmem>>, vector<1x2x128xi8>
    %13 = vector.shape_cast %12 : vector<1x2x128xi8> to vector<2x128xi8>
    %14 = arith.extsi %13 : vector<2x128xi8> to vector<2x128xi32>
    %c0_11 = arith.constant 0 : index
    %c0_12 = arith.constant 0 : index
    %c0_13 = arith.constant 0 : index
    %c0_14 = arith.constant 0 : index
    %15 = vector.load %arg2[%c0_11, %c0_12, %c0_13, %c0_14] : memref<1x6x2x128xf32, #tpu.memory_space<vmem>>, vector<1x1x2x128xf32>
    %16 = vector.shape_cast %15 : vector<1x1x2x128xf32> to vector<2x128xf32>
    %c0_15 = arith.constant 0 : index
    %c1 = arith.constant 1 : index
    %c0_16 = arith.constant 0 : index
    %c0_17 = arith.constant 0 : index
    %17 = vector.load %arg2[%c0_15, %c1, %c0_16, %c0_17] : memref<1x6x2x128xf32, #tpu.memory_space<vmem>>, vector<1x1x2x128xf32>
    %18 = vector.shape_cast %17 : vector<1x1x2x128xf32> to vector<2x128xf32>
    %c0_18 = arith.constant 0 : index
    %c2 = arith.constant 2 : index
    %c0_19 = arith.constant 0 : index
    %c0_20 = arith.constant 0 : index
    %19 = vector.load %arg2[%c0_18, %c2, %c0_19, %c0_20] : memref<1x6x2x128xf32, #tpu.memory_space<vmem>>, vector<1x1x2x128xf32>
    %20 = vector.shape_cast %19 : vector<1x1x2x128xf32> to vector<2x128xf32>
    %c0_21 = arith.constant 0 : index
    %c3 = arith.constant 3 : index
    %c0_22 = arith.constant 0 : index
    %c0_23 = arith.constant 0 : index
    %21 = vector.load %arg2[%c0_21, %c3, %c0_22, %c0_23] : memref<1x6x2x128xf32, #tpu.memory_space<vmem>>, vector<1x1x2x128xf32>
    %22 = vector.shape_cast %21 : vector<1x1x2x128xf32> to vector<2x128xf32>
    %c0_24 = arith.constant 0 : index
    %c4 = arith.constant 4 : index
    %c0_25 = arith.constant 0 : index
    %c0_26 = arith.constant 0 : index
    %23 = vector.load %arg2[%c0_24, %c4, %c0_25, %c0_26] : memref<1x6x2x128xf32, #tpu.memory_space<vmem>>, vector<1x1x2x128xf32>
    %24 = vector.shape_cast %23 : vector<1x1x2x128xf32> to vector<2x128xf32>
    %25 = arith.maximumf %16, %18 : vector<2x128xf32>
    %26 = arith.maximumf %25, %20 : vector<2x128xf32>
    %27 = arith.maximumf %26, %22 : vector<2x128xf32>
    %28 = arith.maximumf %27, %24 : vector<2x128xf32>
    %cst_27 = arith.constant 0.000000e+00 : f32
    %29 = vector.broadcast %cst_27 : f32 to vector<2x128xf32>
    %cst_28 = arith.constant 0.000000e+00 : f32
    %30 = vector.broadcast %cst_28 : f32 to vector<2x128xf32>
    %31 = arith.subf %16, %28 : vector<2x128xf32>
    %32 = math.exp %31 : vector<2x128xf32>
    %33 = arith.addf %29, %32 : vector<2x128xf32>
    %c0_i32 = arith.constant 0 : i32
    %34 = vector.broadcast %c0_i32 : i32 to vector<2x128xi32>
    %35 = arith.cmpi eq, %14, %34 : vector<2x128xi32>
    %cst_29 = arith.constant 0.000000e+00 : f32
    %36 = vector.broadcast %cst_29 : f32 to vector<2x128xf32>
    %37 = arith.select %35, %16, %36 : vector<2x128xi1>, vector<2x128xf32>
    %38 = arith.addf %30, %37 : vector<2x128xf32>
    %39 = arith.subf %18, %28 : vector<2x128xf32>
    %40 = math.exp %39 : vector<2x128xf32>
    %41 = arith.addf %33, %40 : vector<2x128xf32>
    %c1_i32 = arith.constant 1 : i32
    %42 = vector.broadcast %c1_i32 : i32 to vector<2x128xi32>
    %43 = arith.cmpi eq, %14, %42 : vector<2x128xi32>
    %cst_30 = arith.constant 0.000000e+00 : f32
    %44 = vector.broadcast %cst_30 : f32 to vector<2x128xf32>
    %45 = arith.select %43, %18, %44 : vector<2x128xi1>, vector<2x128xf32>
    %46 = arith.addf %38, %45 : vector<2x128xf32>
    %47 = arith.subf %20, %28 : vector<2x128xf32>
    %48 = math.exp %47 : vector<2x128xf32>
    %49 = arith.addf %41, %48 : vector<2x128xf32>
    %c2_i32 = arith.constant 2 : i32
    %50 = vector.broadcast %c2_i32 : i32 to vector<2x128xi32>
    %51 = arith.cmpi eq, %14, %50 : vector<2x128xi32>
    %cst_31 = arith.constant 0.000000e+00 : f32
    %52 = vector.broadcast %cst_31 : f32 to vector<2x128xf32>
    %53 = arith.select %51, %20, %52 : vector<2x128xi1>, vector<2x128xf32>
    %54 = arith.addf %46, %53 : vector<2x128xf32>
    %55 = arith.subf %22, %28 : vector<2x128xf32>
    %56 = math.exp %55 : vector<2x128xf32>
    %57 = arith.addf %49, %56 : vector<2x128xf32>
    %c3_i32 = arith.constant 3 : i32
    %58 = vector.broadcast %c3_i32 : i32 to vector<2x128xi32>
    %59 = arith.cmpi eq, %14, %58 : vector<2x128xi32>
    %cst_32 = arith.constant 0.000000e+00 : f32
    %60 = vector.broadcast %cst_32 : f32 to vector<2x128xf32>
    %61 = arith.select %59, %22, %60 : vector<2x128xi1>, vector<2x128xf32>
    %62 = arith.addf %54, %61 : vector<2x128xf32>
    %63 = arith.subf %24, %28 : vector<2x128xf32>
    %64 = math.exp %63 : vector<2x128xf32>
    %65 = arith.addf %57, %64 : vector<2x128xf32>
    %c4_i32 = arith.constant 4 : i32
    %66 = vector.broadcast %c4_i32 : i32 to vector<2x128xi32>
    %67 = arith.cmpi eq, %14, %66 : vector<2x128xi32>
    %cst_33 = arith.constant 0.000000e+00 : f32
    %68 = vector.broadcast %cst_33 : f32 to vector<2x128xf32>
    %69 = arith.select %67, %24, %68 : vector<2x128xi1>, vector<2x128xf32>
    %70 = arith.addf %62, %69 : vector<2x128xf32>
    %71 = math.log %65 : vector<2x128xf32>
    %72 = arith.addf %71, %28 : vector<2x128xf32>
    %73 = arith.subf %72, %70 : vector<2x128xf32>
    %cst_34 = arith.constant dense<0.000000e+00> : vector<128xf32>
    %74 = vector.multi_reduction <add>, %73, %cst_34 [0] : vector<2x128xf32> to vector<128xf32>
    %75 = vector.shape_cast %74 : vector<128xf32> to vector<1x128xf32>
    %c0_35 = arith.constant 0 : index
    %c0_36 = arith.constant 0 : index
    %c0_37 = arith.constant 0 : index
    %c0_38 = arith.constant 0 : index
    %76 = vector.load %arg6[%c0_35, %c0_36, %c0_37, %c0_38] : memref<1x1x1x128xf32, #tpu.memory_space<vmem>>, vector<1x1x1x128xf32>
    %77 = vector.shape_cast %76 : vector<1x1x1x128xf32> to vector<1x128xf32>
    %78 = vector.shape_cast %75 : vector<1x128xf32> to vector<1x1x1x128xf32>
    tpu.vector_store %arg6[%c0_35, %c0_36, %c0_37, %c0_38], %78 {strides = array<i32>} : memref<1x1x1x128xf32, #tpu.memory_space<vmem>>, vector<1x1x1x128xf32>,
    return
  }
  func.func @transform_0(%arg0: i32, %arg1: i32) -> (i32, i32, i32, i32) {
    %c0_i32 = arith.constant 0 : i32
    %c0_i32_0 = arith.constant 0 : i32
    %c0_i32_1 = arith.constant 0 : i32
    return %arg0, %c0_i32, %arg1, %c0_i32_0 : i32, i32, i32, i32
  }
  func.func @transform_1(%arg0: i32, %arg1: i32) -> (i32, i32, i32) {
    %c0_i32 = arith.constant 0 : i32
    %c0_i32_0 = arith.constant 0 : i32
    return %arg0, %arg1, %c0_i32 : i32, i32, i32
  }
  func.func @transform_2(%arg0: i32, %arg1: i32) -> (i32, i32, i32) {
    %c0_i32 = arith.constant 0 : i32
    %c0_i32_0 = arith.constant 0 : i32
    return %arg0, %arg1, %c0_i32 : i32, i32, i32
  }
  func.func @transform_3(%arg0: i32, %arg1: i32) -> (i32, i32, i32) {
    %c0_i32 = arith.constant 0 : i32
    %c0_i32_0 = arith.constant 0 : i32
    return %arg0, %arg1, %c0_i32 : i32, i32, i32
  }
  func.func @transform_4(%arg0: i32, %arg1: i32) -> (i32, i32, i32, i32) {
    %c0_i32 = arith.constant 0 : i32
    %c0_i32_0 = arith.constant 0 : i32
    %c0_i32_1 = arith.constant 0 : i32
    return %arg0, %arg1, %c0_i32, %c0_i32_0 : i32, i32, i32, i32
  }
}

</mosaic_0001>

<bundles_post_ra>
// kernel: tpu_custom_call.1
= control target key start
LH: loop header
LB: loop body
LE: loop exit
PB: predicated region body
PF: predicated region fallthrough
CT: control target
= control target key end

     0   :  { %s1198_s0 = inlined_call_operand.hbm [shape: f32[2,6,2,128], index: 0, kind: input, shape index: {}]   ;;  %s1199_s1 = inlined_call_operand.hbm [shape: s8[2,2,128], index: 1, kind: input, shape index: {}]   ;;  %s1200_s2 = inlined_call_operand.hbm [shape: f32[2,2,128], index: 2, kind: output, shape index: {0}]   ;;  %s1201_s3 = inlined_call_operand.hbm [shape: f32[2,2,128], index: 3, kind: output, shape index: {1}]   ;;  %s1202_s4 = inlined_call_operand.hbm [shape: f32[2,1,1,128], index: 4, kind: output, shape index: {2}]  }
   0x1   :  { %1205 = sst [smem:[#allocation16_spill]] %s1198_s0 }
   0x2   :  { %10 = vsyncpa [#allocation3], 0 }
   0x3   :  { %12 = vsyncpa [#allocation3 + $0x1], 0 }
   0x4   :  { %13 = vsyncpa [#allocation6], 0 }
   0x5   :  { %15 = vsyncpa [#allocation6 + $0x1], 0 }
   0x6   :  { %16 = vsyncpa [#allocation4], 0 }
   0x7   :  { %18 = vsyncpa [#allocation4 + $0x1], 0 }
   0x8   :  { %19 = vsyncpa [#allocation9], 0 }
   0x9   :  { %21 = vsyncpa [#allocation9 + $0x1], 0  ;;  %s931_s15 = smov 0   ;;  %s933_s16 = smov 0  }
   0xa   :  { %s935_s17 = smov 0   ;;  %s937_s18 = smov 0  }
   0xb   :  { %s939_s19 = smov 0   ;;  %s941_s20 = smov 0  }
   0xc LB: > { %s962_s21 = sadd.s32 4294967295, %s897_s20   ;;  %s1203_s22 = sadd.s32 4294967294, %s897_s20   ;;  %s897_s20 = sphi %s941_s20, %s27_s20   ;;  %s893_s19 = sphi %s939_s19, %s1221_s19   ;;  %s889_s18 = sphi %s937_s18, %s1220_s18   ;;  %s885_s17 = sphi %s935_s17, %s1219_s17   ;;  %s881_s16 = sphi %s933_s16, %s1218_s16   ;;  %s877_s15 = sphi %s931_s15, %s1217_s15  }
   0xd   : > { %s39_s23 = sadd.s32 1, %s893_s19  ;;  %s48_s24 = sadd.s32 1, %s885_s17 }
   0xe   : > { %p41_p0 = scmp.ge.s32.totalorder %s39_s23, 2  ;;  %p55_p1 = scmp.ne.s32.totalorder %s885_s17, %s881_s16 }
   0xf   : > { %p56_p2 = scmp.eq.s32.totalorder %s897_s20, 0  ;;  %p61_p3 = scmp.ne.s32.totalorder %s881_s16, %s877_s15 }
  0x10   : > { %s1223_s23 = smov (%p41_p0, %s39_s23), 0  ;;  %p62_p5 = scmp.eq.s32.totalorder %s962_s21, 0 }
  0x11   : > { %1206 = sst [smem:[#allocation15_spill]] %s1223_s23  ;;  %p974_p4 = por %p56_p2, %p55_p1 }
  0x12   : > { %s43_s26 = ssub.s32 %s893_s19, %s1223_s23  ;;  %p115_p6 = scmp.eq.s32.totalorder %s962_s21, 1 }
  0x13   : > { %p46_p7 = scmp.eq.s32.totalorder %s43_s26, 0  ;;  %p982_p8 = por %p62_p5, %p61_p3 }
  0x14   : > { %p986_p9 = por %p115_p6, %p55_p1  ;;  %p121_p10 = scmp.eq.s32.totalorder %s1203_s22, 1 }
  0x15   : > { %s993_s29 = scalar_select %p46_p7, %s885_s17, %s48_s24  }
  0x16   : > { %p995_p11 = por %p121_p10, %p61_p3  ;;  %p633_p13 = scmp.lt.s32.totalorder %s897_s20, 2 }
  0x17   : > { %s1002_s5 = sand.u32 1, %s885_s17   ;;  %s604_s7 = smul.u32 192, %s893_s19 }
  0x18   : > { %s603_s6 = smul.u32 12, %s1002_s5  ;;  %p1008_p0 = pnand %p633_p13, %p974_p4 }
  0x19   : > { %s1212_s0 = sld [smem:[#allocation16_spill]]  ;;  %p587_p1 = scmp.ge.s32.totalorder %s897_s20, 1 }
  0x1a   : > { %s201_s12 = scalar_lea.vmem [#allocation2], %s603_s6  ;;  %s198_s14 = scalar_lea.sflag [#allocation3], %s1002_s5 }
  0x1b   : > { %s209_s13 = sshll.u32 %s201_s12, 4  ;;  %p703_p2 = pneg %p1008_p0  ;;  %s210_s13 = int_to_ptr.vmem [resolvable:$true] %s209_s13 }
  0x1c   : > { %s714_s24 = scalar_lea.vmem %s210_s13, 192  ;;  %s899_s25 = smov [#allocation2]  }
  0x1d   : > { %p715_p3 = scmp.ne.s32.totalorder %s210_s13, %s714_s24  ;;  %s719_s26 = sshll.u32 %s899_s25, 4  ;;  %s720_s26 = int_to_ptr.vmem [resolvable:$false] %s719_s26 }
  0x1e   : > { %s721_s9 = scalar_lea.vmem %s720_s26, 384  ;;  %p722_p6 = scmp.lt.s32.totalorder %s210_s13, %s720_s26 }
  0x1f   : > { %s208_s11 = scalar_lea.hbm %s1212_s0, %s604_s7  ;;  %p717_p4 = pnand %p715_p3, %p703_p2 }
  0x20   : > { %p723_p7 = scmp.lt.s32.totalorder %s721_s9, %s714_s24 }
  0x21   : > { %p718_p5 = pneg %p717_p4 }
  0x22   : > { %p724_p10 = por %p723_p7, %p722_p6 }
  0x24   : > { %p725_p13 = pnand %p724_p10, %p718_p5 }
  0x26   : > { %728 = shalt.err (!%p725_p13)
}
  0x27   : > { %s900_s6 = smov 32   ;;  %s901_s7 = smov 2  }
  0x28   : > { %619 = dma.hbm_to_vmem [thread:$0]  (!%p1008_p0), %s208_s11, 192, %s210_s13, %s198_s14, %s900_s6, %s900_s6, %s901_s7  }
  0x29   : > { %p235_p3 = scmp.lt.s32.totalorder %s897_s20, 3  ;;  %s586_s10 = sshll.u32 %s893_s19, 4 }
  0x2a   : > { %s228_s26 = scalar_lea.hbm %s1199_s1, %s586_s10  ;;  %s222_s9 = scalar_lea.vmem [#allocation5], %s1002_s5 }
  0x2b   : > { %p1028_p4 = pnand %p587_p1, %p235_p3  ;;  %s230_s22 = sshll.u32 %s222_s9, 4  ;;  %s231_s22 = int_to_ptr.vmem [resolvable:$true] %s230_s22 }
  0x2c   : > { %s220_s0 = scalar_lea.sflag [#allocation6], %s1002_s5  ;;  %s742_s23 = scalar_lea.vmem %s231_s22, 16 }
  0x2d   : > { %p743_p5 = scmp.ne.s32.totalorder %s231_s22, %s742_s23  ;;  %s902_s11 = smov [#allocation5]  }
  0x2e   : > { %s747_s13 = sshll.u32 %s902_s11, 4  ;;  %s748_s13 = int_to_ptr.vmem [resolvable:$false] %s747_s13 }
  0x2f   : > { %p745_p6 = pnand %p743_p5, %p703_p2  ;;  %s749_s14 = scalar_lea.vmem %s748_s13, 32 }
  0x30   : > { %p750_p1 = scmp.lt.s32.totalorder %s231_s22, %s748_s13  ;;  %p751_p10 = scmp.lt.s32.totalorder %s749_s14, %s742_s23 }
  0x31   : > { %p746_p7 = pneg %p745_p6 }
  0x32   : > { %p752_p13 = por %p751_p10, %p750_p1 }
  0x34   : > { %p753_p3 = pnand %p752_p13, %p746_p7 }
  0x36   : > { %756 = shalt.err (!%p753_p3)
}
  0x37   : > { %622 = dma.hbm_to_vmem [thread:$0]  (!%p1008_p0), %s228_s26, 16, %s231_s22, %s220_s0  }
  0x38   : > { %239 = sbr.rel (%p1028_p4) target bundleno = 173 (0xad), region = 28  ;;  %s1045_s5 = sand.u32 (!%p1028_p4), 1, %s881_s16  }
  0x39   : > { %s605_s6 = smul.u32 (!%p1028_p4), 12, %s1045_s5  ;;  %s242_s7 = scalar_lea.sflag (!%p1028_p4), [#allocation3], %s1045_s5 }
  0x3b   : > { %s245_s10 = scalar_lea.vmem (!%p1028_p4), [#allocation2], %s605_s6 }
  0x3d   : > { %860 = dma.done.wait (%p982_p8), %s242_s7, 192  }
  0x3e   : > { %862 = vsyncadd (%p982_p8), %s242_s7, 4294967104  ;;  %s251_s0 = scalar_lea.sflag [#allocation6], %s1045_s5  ;;  %s253_s22 = scalar_lea.vmem [#allocation5], %s1045_s5 }
  0x3f   : > { %864 = dma.done.wait (%p982_p8), %s251_s0, 16  }
  0x40   : > { %866 = vsyncadd (%p982_p8), %s251_s0, 4294967280  ;;  %v590_v0 = vld [vmem:[%s245_s10 + $0xa] sm:$0x3]  ;;  %v1059_v1 = vld [vmem:[%s245_s10] sm:$0x3]  ;;  %s588_s23 = sshll.u32 %s1045_s5, 1 }
  0x41   : > { %v301_v2 = vmul.f32 1.442695, %v590_v0  ;;  %685 = vrsqrt.f32 %v590_v0  ;;  %v1061_v3 = vld [vmem:[%s245_s10 + $0x2] sm:$0x3]  ;;  %v1063_v4 = vld [vmem:[%s245_s10 + $0x4] sm:$0x3] }
  0x42   : > { %v316_v5 = vmax.f32 %v1059_v1, %v1061_v3  ;;  %v1067_v6 = vld [vmem:[%s245_s10 + $0x6] sm:$0x3]  ;;  %v1070_v8 = vld [vmem:[%s245_s10 + $0x8] sm:$0x3]  ;;  %s284_s27 = scalar_lea.vmem [#allocation8], %s588_s23  ;;  %s277_s12 = scalar_lea.vmem [#allocation7], %s588_s23 }
  0x43   : > { %687 = vpow2.f32 %v301_v2  ;;  %s406_s8 = sshll.u32 %s284_s27, 4  ;;  %s392_s24 = sshll.u32 %s277_s12, 4  ;;  %vm295_vm0 = vcmp.eq.f32.partialorder %v590_v0, inf  ;;  %v298_v21 = vand.u32 2147483648, %v590_v0  ;;  %vm297_vm1 = vcmp.eq.f32.partialorder %v590_v0, 0.0  ;;  %s1089_s8 = int_to_ptr.vmem [resolvable:$true] %s406_s8  ;;  %s1091_s24 = int_to_ptr.vmem [resolvable:$true] %s392_s24 }
  0x44   : > { %v317_v7 = vmax.f32 %v316_v5, %v1063_v4  ;;  %s373_s25 = sand.u32 1, %s962_s21   ;;  %s598_s26 = sshll.u32 %s889_s18, 5 }
  0x45   : > { %s1096_s21 = scalar_lea.hbm %s1201_s3, %s598_s26  ;;  %s1101_s6 = scalar_lea.hbm %s1200_s2, %s598_s26 }
  0x46   : > { %v318_v9 = vmax.f32 %v317_v7, %v1067_v6  ;;  %s1103_s7 = scalar_lea.sflag [#allocation9], %s373_s25  ;;  %s757_s10 = scalar_lea.vmem %s1089_s8, 32 }
  0x47   : > { %p758_p8 = scmp.ne.s32.totalorder %s1089_s8, %s757_s10  ;;  %s903_s0 = smov [#allocation8]  }
  0x48   : > { %v1075_v10 = vmax.f32 %v318_v9, %v1070_v8  ;;  %s761_s23 = sshll.u32 %s903_s0, 4  ;;  %s762_s23 = int_to_ptr.vmem [resolvable:$false] %s761_s23 }
  0x49   : > { %p759_p0 = pnand %p758_p8, %p986_p9  ;;  %s763_s9 = scalar_lea.vmem %s762_s23, 64 }
  0x4a   : > { %v320_v11 = vsub.f32 %v1059_v1, %v1075_v10  ;;  %v327_v12 = vsub.f32 %v1061_v3, %v1075_v10  ;;  %v334_v13 = vsub.f32 %v1063_v4, %v1075_v10  ;;  %v341_v14 = vsub.f32 %v1067_v6, %v1075_v10  ;;  %p764_p4 = scmp.lt.s32.totalorder %s1089_s8, %s762_s23  ;;  %p765_p5 = scmp.lt.s32.totalorder %s763_s9, %s757_s10 }
  0x4b   : > { %v348_v15 = vsub.f32 %v1070_v8, %v1075_v10  ;;  %p760_p2 = pneg %p759_p0 }
  0x4c   : > { %v321_v16 = vmul.f32 1.442695, %v320_v11  ;;  %v328_v17 = vmul.f32 1.442695, %v327_v12  ;;  %v335_v18 = vmul.f32 1.442695, %v334_v13  ;;  %p766_p6 = por %p765_p5, %p764_p4 }
  0x4d   : > { %v342_v19 = vmul.f32 1.442695, %v341_v14  ;;  %v349_v23 = vmul.f32 1.442695, %v348_v15 }
  0x4e   : > { %v686_v20 = vpop.eup %685  ;;  %689 = vpow2.f32 %v321_v16  ;;  %p767_p7 = pnand %p766_p6, %p760_p2 }
  0x4f   : > { %v294_v22 = vmul.f32 %v686_v20, %v590_v0  ;;  %691 = vpow2.f32 %v328_v17 }
  0x50   : > { %v688_v24 = vpop.eup %687  ;;  %693 = vpow2.f32 %v335_v18 }
  0x51   : > { %v591_v25 = vadd.f32 -1.0, %v688_v24  ;;  %v296_v26 = vsel %vm295_vm0, %v590_v0, %v294_v22  ;;  %695 = vpow2.f32 %v342_v19 }
  0x52   : > { %v299_v27 = vsel %vm297_vm1, %v298_v21, %v296_v26  ;;  %697 = vpow2.f32 %v349_v23 }
  0x53   : > { %304 = vst [vmem:[%s284_s27] sm:$0x3] %v591_v25  ;;  %300 = vst [vmem:[%s277_s12] sm:$0x3] %v299_v27 }
  0x54   : > { %770 = shalt.err (!%p767_p7)
}
  0x55   : > { %s771_s27 = scalar_lea.hbm %s1096_s21, 32  ;;  %s775_s26 = scalar_lea.hbm %s1201_s3, 64 }
  0x56   : > { %p772_p1 = scmp.ne.s32.totalorder %s1096_s21, %s771_s27  ;;  %p776_p3 = scmp.lt.s32.totalorder %s1096_s21, %s1201_s3 }
  0x57   : > { %p777_p8 = scmp.lt.s32.totalorder %s775_s26, %s771_s27 }
  0x58   : > { %p773_p10 = pnand %p772_p1, %p986_p9 }
  0x59   : > { %p778_p0 = por %p777_p8, %p776_p3 }
  0x5a   : > { %p774_p13 = pneg %p773_p10 }
  0x5c   : > { %p779_p2 = pnand %p778_p0, %p774_p13 }
  0x5e   : > { %782 = shalt.err (!%p779_p2)
}
  0x5f   : > { %611 = dma.vmem_to_hbm [thread:$0]  (%p986_p9), %s1089_s8, 32, %s1096_s21, %s1103_s7  }
  0x60   : > { %s369_s14 = scalar_lea.sflag [#allocation4], %s1045_s5  ;;  %s783_s10 = scalar_lea.vmem %s1091_s24, 32 }
  0x61   : > { %p784_p4 = scmp.ne.s32.totalorder %s1091_s24, %s783_s10  ;;  %s904_s0 = smov [#allocation7]  }
  0x62   : > { %s787_s23 = sshll.u32 %s904_s0, 4  ;;  %s788_s23 = int_to_ptr.vmem [resolvable:$false] %s787_s23 }
  0x63   : > { %p785_p5 = pnand %p784_p4, %p986_p9  ;;  %s789_s9 = scalar_lea.vmem %s788_s23, 64 }
  0x64   : > { %p790_p7 = scmp.lt.s32.totalorder %s1091_s24, %s788_s23  ;;  %p791_p1 = scmp.lt.s32.totalorder %s789_s9, %s783_s10 }
  0x65   : > { %p786_p6 = pneg %p785_p5 }
  0x66   : > { %p792_p10 = por %p791_p1, %p790_p7 }
  0x68   : > { %p793_p13 = pnand %p792_p10, %p786_p6 }
  0x6a   : > { %796 = shalt.err (!%p793_p13)
}
  0x6b   : > { %s797_s8 = scalar_lea.hbm %s1101_s6, 32  ;;  %s801_s12 = scalar_lea.hbm %s1200_s2, 64 }
  0x6c   : > { %p798_p3 = scmp.ne.s32.totalorder %s1101_s6, %s797_s8  ;;  %p802_p2 = scmp.lt.s32.totalorder %s1101_s6, %s1200_s2 }
  0x6d   : > { %p803_p4 = scmp.lt.s32.totalorder %s801_s12, %s797_s8 }
  0x6e   : > { %p799_p8 = pnand %p798_p3, %p986_p9 }
  0x6f   : > { %p804_p5 = por %p803_p4, %p802_p2 }
  0x70   : > { %p800_p0 = pneg %p799_p8 }
  0x72   : > { %p805_p6 = pnand %p804_p5, %p800_p0 }
  0x74   : > { %808 = shalt.err (!%p805_p6)
}
  0x75   : > { %610 = dma.vmem_to_hbm [thread:$0]  (%p986_p9), %s1091_s24, 32, %s1101_s6, %s369_s14   ;;  %v305_v28 = vld [vmem:[%s253_s22] sm:$0x1]  ;;  %v690_v29 = vpop.eup %689  ;;  %vm359_vm7 = vcmask 1041408  }
  0x76   : > { %v692_v30 = vpop.eup %691  ;;  %v306_v32 = vunpack.c.0.s8 %v305_v28  ;;  %s290_s22 = scalar_lea.vmem [#allocation10], %s1045_s5  ;;  %s600_s6 = sshll.u32 %s889_s18, 4 }
  0x77   : > { %v694_v31 = vpop.eup %693  ;;  %v330_v33 = vadd.f32 %v692_v30, %v690_v29  ;;  %s420_s24 = sshll.u32 %s290_s22, 4  ;;  %s418_s14 = scalar_lea.hbm %s1202_s4, %s600_s6  ;;  %s421_s24 = int_to_ptr.vmem [resolvable:$true] %s420_s24 }
  0x78   : > { %v696_v34 = vpop.eup %695  ;;  %vm324_vm2 = vcmp.eq.s32.totalorder %v306_v32, 0  ;;  %vm331_vm3 = vcmp.eq.s32.totalorder %v306_v32, 1  ;;  %vm338_vm4 = vcmp.eq.s32.totalorder %v306_v32, 2  ;;  %vm345_vm5 = vcmp.eq.s32.totalorder %v306_v32, 3  ;;  %s809_s10 = scalar_lea.vmem %s421_s24, 16  ;;  %s905_s0 = smov [#allocation10]  }
  0x79   : > { %v337_v35 = vadd.f32 %v694_v31, %v330_v33  ;;  %v698_v36 = vpop.eup %697  ;;  %v325_v39 = vsel %vm324_vm2, %v1059_v1, 0.0  ;;  %v332_v40 = vsel %vm331_vm3, %v1061_v3, 0.0  ;;  %v339_v42 = vsel %vm338_vm4, %v1063_v4, 0.0  ;;  %p810_p7 = scmp.ne.s32.totalorder %s421_s24, %s809_s10  ;;  %s813_s23 = sshll.u32 %s905_s0, 4  ;;  %s814_s23 = int_to_ptr.vmem [resolvable:$false] %s813_s23 }
  0x7a   : > { %v333_v41 = vadd.f32 %v332_v40, %v325_v39  ;;  %v346_v44 = vsel %vm345_vm5, %v1067_v6, 0.0  ;;  %vm352_vm6 = vcmp.eq.s32.totalorder %v306_v32, 4  ;;  %s815_s9 = scalar_lea.vmem %s814_s23, 32  ;;  %p816_p13 = scmp.lt.s32.totalorder %s421_s24, %s814_s23 }
  0x7b   : > { %v344_v37 = vadd.f32 %v696_v34, %v337_v35  ;;  %v353_v46 = vsel %vm352_vm6, %v1070_v8, 0.0  ;;  %p811_p1 = pnand %p810_p7, %p986_p9  ;;  %p817_p3 = scmp.lt.s32.totalorder %s815_s9, %s809_s10 }
  0x7c   : > { %v340_v43 = vadd.f32 %v339_v42, %v333_v41 }
  0x7d   : > { %v351_v38 = vadd.f32 %v698_v36, %v344_v37  ;;  %p812_p10 = pneg %p811_p1  ;;  %p818_p8 = por %p817_p3, %p816_p13 }
  0x7e   : > { %v347_v45 = vadd.f32 %v346_v44, %v340_v43 }
  0x7f   : > { %699 = vlog2.f32 %v351_v38  ;;  %p819_p0 = pnand %p818_p8, %p812_p10 }
  0x80   : > { %v354_v48 = vadd.f32 %v353_v46, %v347_v45 }
  0x8c   : > { %v700_v47 = vpop.eup %699 }
  0x8d   : > { %v356_v49 = vmul.f32 0.6931472, %v700_v47 }
  0x8f   : > { %v357_v50 = vadd.f32 %v356_v49, %v1075_v10 }
  0x91   : > { %v358_v51 = vsub.f32 %v357_v50, %v354_v48 }
  0x93   : > { %v360_v52 = vsel %vm359_vm7, %v358_v51, 0.0 }
  0x94   : > { %v361_v53 = vrot.slane %v360_v52, 4 }
  0x96   : > { %v362_v54 = vadd.f32 %v361_v53, %v360_v52 }
  0x98   : > { %v363_v55 = vrot.slane %v362_v54, 2 }
  0x9a   : > { %v364_v56 = vadd.f32 %v363_v55, %v362_v54 }
  0x9c   : > { %v365_v57 = vrot.slane %v364_v56, 1 }
  0x9e   : > { %v366_v58 = vadd.f32 %v365_v57, %v364_v56 }
  0xa0   : > { %367 = vst [vmem:[%s290_s22] sm:$0x1] %v366_v58 }
  0xa1   : > { %822 = shalt.err (!%p819_p0)
}
  0xa2   : > { %s823_s18 = scalar_lea.hbm %s418_s14, 16  ;;  %s827_s21 = scalar_lea.hbm %s1202_s4, 32 }
  0xa3   : > { %p824_p2 = scmp.ne.s32.totalorder %s418_s14, %s823_s18  ;;  %p828_p6 = scmp.lt.s32.totalorder %s418_s14, %s1202_s4 }
  0xa4   : > { %p829_p7 = scmp.lt.s32.totalorder %s827_s21, %s823_s18 }
  0xa5   : > { %p825_p4 = pnand %p824_p2, %p986_p9 }
  0xa6   : > { %p830_p1 = por %p829_p7, %p828_p6 }
  0xa7   : > { %p826_p5 = pneg %p825_p4 }
  0xa9   : > { %p831_p12 = pnand %p830_p1, %p826_p5 }
  0xab   : > { %834 = shalt.err (!%p831_p12)
}
  0xac   : > { %612 = dma.vmem_to_hbm [thread:$0]  (%p986_p9), %s421_s24, 16, %s418_s14, %s1103_s7  }
  0xad PF: > { %s432_s25 = sand.u32 1, %s877_s15   ;;  %p1214_p10 = scmp.ge.s32.totalorder %s897_s20, 2 }
  0xae   : > { %s433_s26 = scalar_lea.sflag [#allocation4], %s432_s25 }
  0xaf   : > { %p624_p13 = pnand %p1214_p10, %p995_p11 }
  0xb1   : > { %p625_p3 = pneg %p624_p13 }
  0xb3   : > { %868 = dma.done.wait (%p625_p3), %s433_s26, 32  }
  0xb4   : > { %870 = vsyncadd (%p625_p3), %s433_s26, 4294967264  ;;  %s1215_s22 = sadd.s32 4294967294, %s897_s20  }
  0xb5   : > { %s441_s6 = sand.u32 1, %s1215_s22  }
  0xb6   : > { %s442_s11 = scalar_lea.sflag [#allocation9], %s441_s6 }
  0xb7   : > { %872 = dma.done.wait (%p625_p3), %s442_s11, 48  }
  0xb8   : > { %874 = vsyncadd (%p625_p3), %s442_s11, 4294967248  ;;  %s27_s20 = sadd.s32 1, %s897_s20   ;;  %s1216_s28 = sld [smem:[#allocation15_spill]] }
  0xb9   : > { %p24_p9 = scmp.ge.s32.totalorder %s27_s20, 4   ;;  %s1217_s15 = smov %s881_s16 }
  0xba   : > { %s1218_s16 = smov %s885_s17  ;;  %s1219_s17 = smov %s993_s29 }
  0xbb   : > { %s1220_s18 = smov %s893_s19  ;;  %26 = sbr.rel (!%p24_p9) target bundleno = 12 (0xc), region = 123 }
  0xbe   : > { %s1221_s19 = smov %s1216_s28 }
  0xc0   :  { %455 = vsyncpa [#allocation3], 1 }
  0xc1   :  { %457 = vsyncpa [#allocation3 + $0x1], 1 }
  0xc2   :  { %458 = vsyncpa [#allocation6], 1 }
  0xc3   :  { %460 = vsyncpa [#allocation6 + $0x1], 1 }
  0xc4   :  { %461 = vsyncpa [#allocation4], 1 }
  0xc5   :  { %463 = vsyncpa [#allocation4 + $0x1], 1 }
  0xc6   :  { %464 = vsyncpa [#allocation9], 1 }
  0xc7   :  { %466 = vsyncpa [#allocation9 + $0x1], 1 }

</bundles_post_ra>
